<compile_context>
chip_gen: v6e
topology: v6e:2x2x1
jax: 0.10.0
libtpu: 0.0.40
codegen_flags: <defaults>
</compile_context>

<pallas_src>
import jax
import jax.numpy as jnp
from jax import lax
from jax.experimental import pallas as pl
from jax.experimental.pallas import tpu as pltpu

EPS = 1e-5

_ROLL_SIGN = None  # +1 / -1, filled in lazily by _roll_sign()


def _roll_sign():
    """One-time hardware probe of pltpu.roll's shift convention.

    Returns sign s such that pltpu.roll(x, (s * off) % n, axis) yields
    result[i] = x[(i + off) % n] (the shift needed for conv taps). For standard
    jnp.roll/np.roll semantics s == -1. This is a tiny portability guard so a
    convention difference can never silently corrupt the conv.
    """
    global _ROLL_SIGN
    if _ROLL_SIGN is None:
        def probe(x_ref, o_ref):
            o_ref[...] = pltpu.roll(x_ref[...], 1, 1)

        x = jnp.tile(jnp.arange(128, dtype=jnp.float32)[None, :], (8, 1))
        out = pl.pallas_call(
            probe, out_shape=jax.ShapeDtypeStruct((8, 128), jnp.float32))(x)
        first = float(out[0, 0])
        # np.roll convention: result[0] = x[-1] = 127  -> shift = -off
        # opposite convention: result[0] = x[+1] = 1   -> shift = +off
        _ROLL_SIGN = 1 if abs(first - 1.0) < 0.5 else -1
    return _ROLL_SIGN


def _make_basic_block_kernel(NB, H, W, Cin, Cout, use_conv1x1, compute_dtype,
                             roll_sign):
    """Fused BasicBlock kernel; one grid step processes NB images."""
    S = H * W
    NBS = NB * S
    w_shift = (W - 1).bit_length()            # log2(W); H, W are powers of two

    def kernel(*refs):
        (x_ref, s1_ref, b1_ref, w1_ref, s2_ref, b2_ref, w2_ref) = refs[:7]
        k = 7
        if use_conv1x1:
            wsc_ref = refs[k]
            k += 1
        o_ref, act_buf, imcol1, imcol2 = refs[k:k + 4]

        one = jnp.asarray(1.0, compute_dtype)
        zero = jnp.asarray(0.0, compute_dtype)

        # ---- border masks: channel-invariant, built once per step -----------
        r = lax.broadcasted_iota(jnp.int32, (1, NBS), 1)
        w_pos = jnp.bitwise_and(r, W - 1)                             # r %  W
        h_pos = jnp.bitwise_and(jnp.right_shift(r, w_shift), H - 1)   # (r//W)%H
        m_top = jnp.where(h_pos >= 1, one, zero)        # valid when dy == -1
        m_bot = jnp.where(h_pos <= H - 2, one, zero)    # valid when dy == +1
        m_left = jnp.where(w_pos >= 1, one, zero)       # valid when dx == -1
        m_right = jnp.where(w_pos <= W - 2, one, zero)  # valid when dx == +1

        def conv3x3(act, C, w_ref, imcol_ref):
            """3x3 / pad=1 / stride=1 conv as a single im2col MXU matmul.

            act: (C, NBS) compute_dtype value (flat spatial, lane-dense).
            The 9 rolled+masked taps are written as aligned slabs of imcol_ref
            ((9*C, NBS)); then one (Cout, 9*C) @ (9*C, NBS) dot, f32 accumulate.
            """
            t = 0
            for dy in (-1, 0, 1):
                for dx in (-1, 0, 1):
                    off = dy * W + dx                   # tap[i] = act[i + off]
                    if off == 0:
                        tap = act
                    else:
                        tap = pltpu.roll(act, (roll_sign * off) % NBS, 1)
                    mask = None
                    if dy == -1:
                        mask = m_top
                    elif dy == 1:
                        mask = m_bot
                    if dx == -1:
                        mask = m_left if mask is None else mask * m_left
                    elif dx == 1:
                        mask = m_right if mask is None else mask * m_right
                    if mask is not None:
                        tap = tap * mask                # mask at staging time
                    imcol_ref[t * C:(t + 1) * C, :] = tap
                    t += 1
            return jnp.dot(w_ref[...], imcol_ref[...],
                           preferred_element_type=jnp.float32)

        # ---- bn1 (folded scale/bias) + relu on the whole block ---------------
        act = jnp.maximum(x_ref[...] * s1_ref[...] + b1_ref[...], 0.0)
        act = act.astype(compute_dtype)                 # (NB, Cin, S)
        for n in range(NB):                             # lane-aligned slab stores
            act_buf[:, n * S:(n + 1) * S] = act[n]
        act_all = act_buf[...]                          # (Cin, NBS)

        # ---- conv1: 3x3, pad=1, stride=1 --------------------------------------
        acc1 = conv3x3(act_all, Cin, w1_ref, imcol1)    # (Cout, NBS) f32

        # ---- bn2 + relu (dropout: identity in eval mode) ----------------------
        # TODO(synk): training-mode dropout and stride > 1 are not implemented.
        h2 = jnp.maximum(acc1 * s2_ref[...] + b2_ref[...], 0.0)
        h2 = h2.astype(compute_dtype)                   # (Cout, NBS)

        # ---- conv2: 3x3, pad=1, stride=1 + (projection) shortcut --------------
        acc2 = conv3x3(h2, Cout, w2_ref, imcol2)        # (Cout, NBS) f32
        if use_conv1x1:
            acc2 = acc2 + jnp.dot(wsc_ref[...], act_all,
                                  preferred_element_type=jnp.float32)

        # ---- lane-dense, NCHW-native writeback --------------------------------
        for n in range(NB):
            res = acc2[:, n * S:(n + 1) * S]
            if not use_conv1x1:
                res = res + x_ref[n]                    # identity shortcut = raw x
            o_ref[n] = res.astype(o_ref.dtype)

    return kernel


def _vmem_bytes_per_step(NB, S, Cin, Cout, use_conv1x1, cbytes=2):
    """Rough per-grid-step VMEM footprint: double-buffered blocks + scratch +
    dominant f32 live values. Used for NB selection and vmem_limit_bytes."""
    NBS = NB * S
    x_blk = NB * Cin * S * 4
    o_blk = NB * Cout * S * 4
    w_blk = (9 * Cin * Cout + 9 * Cout * Cout
             + (Cin * Cout if use_conv1x1 else 0)) * cbytes
    bn_blk = (2 * Cin + 2 * Cout) * 4
    scratch = (Cin + 9 * Cin + 9 * Cout) * NBS * cbytes
    live_f32 = (NB * Cin * S + 3 * Cout * NBS) * 4
    return 2 * (x_blk + o_blk + w_blk + bn_blk) + scratch + live_f32


def basic_block_forward(x_nchw, params, stride=1, compute_dtype=jnp.bfloat16,
                        images_per_step=None, min_grid_steps=2):
    """Pallas BasicBlock forward. x_nchw: (N, Cin, H, W) f32 -> (N, Cout, H, W) f32."""
    assert stride == 1, "stride > 1 not implemented in this kernel"   # TODO(synk)
    N, Cin, H, W = x_nchw.shape
    assert (H & (H - 1)) == 0 and (W & (W - 1)) == 0, "power-of-two H, W assumed"
    S = H * W
    assert S % 128 == 0, "H*W must be a multiple of 128 (lane-dense blocks)"
    Cout = params['w1'].shape[-1]
    use_conv1x1 = params.get('wsc') is not None
    if not use_conv1x1:
        assert Cin == Cout, "identity shortcut requires Cin == Cout"
    cbytes = jnp.dtype(compute_dtype).itemsize

    # --- VMEM-aware choice of images per grid step (keep >= min_grid_steps) ---
    try:
        hw_vmem = int(pltpu.get_tpu_info().vmem_capacity_bytes)
    except Exception:
        hw_vmem = 64 * 1024 * 1024          # v7x per-core floor as a safe default
    if images_per_step is None:
        budget = int(hw_vmem * 0.6)
        NB = 1
        for d in range(1, N + 1):
            if N % d != 0:
                continue
            if d > 1 and (N // d) < min_grid_steps:
                continue                     # keep enough steps for core sharding
            if _vmem_bytes_per_step(d, S, Cin, Cout, use_conv1x1, cbytes) > budget:
                continue
            NB = d
    else:
        NB = images_per_step
    assert N % NB == 0
    NBS = NB * S

    x = x_nchw.astype(jnp.float32).reshape(N, Cin, S)   # free reshape of NCHW

    # Fold eval-mode BatchNorm into per-channel scale / bias (f32).
    s1 = params['gamma1'] * lax.rsqrt(params['var1'] + EPS)
    b1 = params['beta1'] - params['mean1'] * s1
    s2 = params['gamma2'] * lax.rsqrt(params['var2'] + EPS)
    b2 = params['beta2'] - params['mean2'] * s2
    s1 = s1.reshape(1, Cin, 1).astype(jnp.float32)
    b1 = b1.reshape(1, Cin, 1).astype(jnp.float32)
    s2 = s2.reshape(Cout, 1).astype(jnp.float32)
    b2 = b2.reshape(Cout, 1).astype(jnp.float32)

    # im2col weight layout: column index = (ky*3 + kx) * C + c, matching the
    # tap-slab layout staged in the kernel -> one (Cout, 9*C) matmul per conv.
    w1t = jnp.transpose(params['w1'], (3, 0, 1, 2)).reshape(Cout, 9 * Cin)
    w2t = jnp.transpose(params['w2'], (3, 0, 1, 2)).reshape(Cout, 9 * Cout)
    w1t = w1t.astype(compute_dtype)
    w2t = w2t.astype(compute_dtype)

    kernel = _make_basic_block_kernel(NB, H, W, Cin, Cout, use_conv1x1,
                                      compute_dtype, _roll_sign())

    in_specs = [
        pl.BlockSpec((NB, Cin, S), lambda b: (b, 0, 0)),        # x (NCHW-flat)
        pl.BlockSpec((1, Cin, 1), lambda b: (0, 0, 0)),         # bn1 scale
        pl.BlockSpec((1, Cin, 1), lambda b: (0, 0, 0)),         # bn1 bias
        pl.BlockSpec((Cout, 9 * Cin), lambda b: (0, 0)),        # conv1 im2col W
        pl.BlockSpec((Cout, 1), lambda b: (0, 0)),              # bn2 scale
        pl.BlockSpec((Cout, 1), lambda b: (0, 0)),              # bn2 bias
        pl.BlockSpec((Cout, 9 * Cout), lambda b: (0, 0)),       # conv2 im2col W
    ]
    # TODO(synk): single-buffer these constant-index operands on v7x
    # (pipeline_mode=pl.Buffered(1) or one-time manual DMA) at production widths.
    operands = [x, s1, b1, w1t, s2, b2, w2t]
    if use_conv1x1:
        wsct = jnp.transpose(params['wsc']).astype(compute_dtype)   # (Cout, Cin)
        in_specs.append(pl.BlockSpec((Cout, Cin), lambda b: (0, 0)))
        operands.append(wsct)

    est = _vmem_bytes_per_step(NB, S, Cin, Cout, use_conv1x1, cbytes)
    vmem_limit = int(min(hw_vmem, max(2 * est, 32 * 1024 * 1024)))

    out = pl.pallas_call(
        kernel,
        out_shape=jax.ShapeDtypeStruct((N, Cout, S), jnp.float32),
        grid_spec=pltpu.PrefetchScalarGridSpec(
            num_scalar_prefetch=0,
            grid=(N // NB,),
            in_specs=in_specs,
            out_specs=pl.BlockSpec((NB, Cout, S), lambda b: (b, 0, 0)),
            scratch_shapes=[
                pltpu.VMEM((Cin, NBS), compute_dtype),        # staged bn1 act
                pltpu.VMEM((9 * Cin, NBS), compute_dtype),    # im2col (conv1)
                pltpu.VMEM((9 * Cout, NBS), compute_dtype),   # im2col (conv2)
            ],
        ),
        compiler_params=pltpu.CompilerParams(
            dimension_semantics=("parallel",),
            vmem_limit_bytes=vmem_limit),
    )(*operands)

    return out.reshape(N, Cout, H, W)       # free reshape: already NCHW-ordered


def ref_forward(x_nchw, params, stride=1, conv_dtype=None):
    """Pure-JAX reference (lax conv). If conv_dtype is set, conv operands are
    cast to it with f32 accumulation, mirroring the kernel's bf16 path."""
    x = jnp.transpose(x_nchw, (0, 2, 3, 1)).astype(jnp.float32)   # NHWC
    dn = ('NHWC', 'HWIO', 'NHWC')

    def bn(h, g, b, m, v):
        return (h - m) / jnp.sqrt(v + EPS) * g + b

    def cast(a):
        return a if conv_dtype is None else a.astype(conv_dtype)

    act = jax.nn.relu(bn(x, params['gamma1'], params['beta1'],
                         params['mean1'], params['var1']))
    act_c = cast(act)
    if params.get('wsc') is not None:
        Cin, Cout = params['wsc'].shape
        shortcut = lax.conv_general_dilated(
            act_c, cast(params['wsc'].reshape(1, 1, Cin, Cout)),
            window_strides=(stride, stride), padding='VALID',
            dimension_numbers=dn, preferred_element_type=jnp.float32)
    else:
        shortcut = x
    out = lax.conv_general_dilated(act_c, cast(params['w1']), (stride, stride),
                                   ((1, 1), (1, 1)), dimension_numbers=dn,
                                   preferred_element_type=jnp.float32)
    out = jax.nn.relu(bn(out, params['gamma2'], params['beta2'],
                         params['mean2'], params['var2']))
    out = lax.conv_general_dilated(cast(out), cast(params['w2']), (1, 1),
                                   ((1, 1), (1, 1)), dimension_numbers=dn,
                                   preferred_element_type=jnp.float32)
    out = out + shortcut
    return jnp.transpose(out, (0, 3, 1, 2))


def _make_params(key, inplanes, planes, with_projection):
    ks = jax.random.split(key, 12)
    p = dict(
        gamma1=jax.random.uniform(ks[0], (inplanes,), jnp.float32, 0.5, 1.5),
        beta1=jax.random.normal(ks[1], (inplanes,), jnp.float32) * 0.1,
        mean1=jax.random.normal(ks[2], (inplanes,), jnp.float32) * 0.1,
        var1=jax.random.uniform(ks[3], (inplanes,), jnp.float32, 0.5, 1.5),
        w1=jax.random.normal(ks[4], (3, 3, inplanes, planes), jnp.float32) * 0.1,
        gamma2=jax.random.uniform(ks[5], (planes,), jnp.float32, 0.5, 1.5),
        beta2=jax.random.normal(ks[6], (planes,), jnp.float32) * 0.1,
        mean2=jax.random.normal(ks[7], (planes,), jnp.float32) * 0.1,
        var2=jax.random.uniform(ks[8], (planes,), jnp.float32, 0.5, 1.5),
        w2=jax.random.normal(ks[9], (3, 3, planes, planes), jnp.float32) * 0.1,
        wsc=(jax.random.normal(ks[10], (inplanes, planes), jnp.float32) * 0.1
             if with_projection else None),
    )
    return p, ks[11]


if __name__ == "__main__":
    key = jax.random.PRNGKey(0)
    key_a, key_b = jax.random.split(key)

    # Case 1: projection shortcut (inplanes != planes -> conv1x1 branch).
    p_proj, kx1 = _make_params(key_a, inplanes=8, planes=16, with_projection=True)
    x1 = jax.random.normal(kx1, (2, 8, 16, 16), jnp.float32)
    out1 = jax.block_until_ready(basic_block_forward(x1, p_proj, stride=1))
    assert out1.shape == (2, 16, 16, 16), out1.shape

    ref1_q = ref_forward(x1, p_proj, conv_dtype=jnp.bfloat16)   # same quant points
    err1 = float(jnp.max(jnp.abs(out1 - ref1_q)))
    if not bool(jnp.allclose(out1, ref1_q, atol=2e-2, rtol=2e-2)):
        raise AssertionError(f"proj-shortcut mismatch vs bf16 reference: {err1}")
    ref1_f = ref_forward(x1, p_proj, conv_dtype=None)
    err1f = float(jnp.max(jnp.abs(out1 - ref1_f)))
    if not bool(jnp.allclose(out1, ref1_f, atol=1e-1, rtol=1e-1)):
        raise AssertionError(f"proj-shortcut mismatch vs f32 reference: {err1f}")

    # Case 2: identity shortcut (inplanes == planes, stride == 1).
    p_id, kx2 = _make_params(key_b, inplanes=16, planes=16, with_projection=False)
    x2 = jax.random.normal(kx2, (2, 16, 16, 16), jnp.float32)
    out2 = jax.block_until_ready(basic_block_forward(x2, p_id, stride=1))
    assert out2.shape == (2, 16, 16, 16), out2.shape

    ref2_q = ref_forward(x2, p_id, conv_dtype=jnp.bfloat16)
    err2 = float(jnp.max(jnp.abs(out2 - ref2_q)))
    if not bool(jnp.allclose(out2, ref2_q, atol=2e-2, rtol=2e-2)):
        raise AssertionError(f"identity-shortcut mismatch vs bf16 reference: {err2}")
    ref2_f = ref_forward(x2, p_id, conv_dtype=None)
    err2f = float(jnp.max(jnp.abs(out2 - ref2_f)))
    if not bool(jnp.allclose(out2, ref2_f, atol=1e-1, rtol=1e-1)):
        raise AssertionError(f"identity-shortcut mismatch vs f32 reference: {err2f}")

    print("KERNEL_OK")
</pallas_src>

<mosaic_0001>
module attributes {stable_mosaic.version = 11 : i64} {
  func.func @probe(%arg0: memref<8x128xf32, #tpu.memory_space<vmem>>, %arg1: memref<8x128xf32, #tpu.memory_space<vmem>>) attributes {dimension_semantics = [], scalar_prefetch = 0 : i64, scratch_operands = 0 : i64, tpu.core_type = #tpu.core_type<tc>} {
    %c0 = arith.constant 0 : index
    %c0_0 = arith.constant 0 : index
    %0 = vector.load %arg0[%c0, %c0_0] : memref<8x128xf32, #tpu.memory_space<vmem>>, vector<8x128xf32>
    %c1_i32 = arith.constant 1 : i32
    %1 = tpu.dynamic_rotate %0 by %c1_i32 dim 1 : vector<8x128xf32>, i32 -> vector<8x128xf32>
    %c0_1 = arith.constant 0 : index
    %c0_2 = arith.constant 0 : index
    %2 = vector.load %arg1[%c0_1, %c0_2] : memref<8x128xf32, #tpu.memory_space<vmem>>, vector<8x128xf32>
    tpu.vector_store %arg1[%c0_1, %c0_2], %1 {strides = array<i32>} : memref<8x128xf32, #tpu.memory_space<vmem>>, vector<8x128xf32>,
    return
  }
}

</mosaic_0001>

<bundles_post_ra>
// kernel: tpu_custom_call.1
= control target key start
LH: loop header
LB: loop body
LE: loop exit
PB: predicated region body
PF: predicated region fallthrough
CT: control target
= control target key end

     0   :  { %6 = vsyncpa [#allocation3], 0  ;;  %s106_s0 = inlined_call_operand.hbm [shape: f32[8,128], index: 0, kind: input, shape index: {}]   ;;  %s107_s1 = inlined_call_operand.hbm [shape: f32[8,128], index: 1, kind: output, shape index: {}]  }
   0x1   :  { %7 = vsyncpa [#allocation4], 0  ;;  %s87_s6 = smov [#allocation2]  }
   0x2   :  { %s14_s7 = sshll.u32 %s87_s6, 4  ;;  %s15_s7 = int_to_ptr.vmem [resolvable:$true] %s14_s7 }
   0x3   :  { %s51_s8 = scalar_lea.vmem %s15_s7, 128  ;;  %p56_p1 = scmp.lt.s32.totalorder %s15_s7, %s15_s7 }
   0x4   :  { %p52_p0 = scmp.ne.s32.totalorder %s15_s7, %s51_s8  ;;  %p57_p2 = scmp.lt.s32.totalorder %s51_s8, %s51_s8 }
   0x6   :  { %p58_p3 = por %p57_p2, %p56_p1 }
   0x8   :  { %p59_p4 = pnand %p58_p3, %p52_p0 }
   0xa   :  { %62 = shalt.err (!%p59_p4)
}
   0xb   :  { %17 = dma.hbm_to_vmem [thread:$0]  %s106_s0, 128, %s15_s7, [#allocation3]  }
   0xc   :  { %83 = dma.done.wait [#allocation3], 128  }
   0xd   :  { %84 = vsyncadd [#allocation3], 4294967168  ;;  %v21_v0 = vld [vmem:[#allocation2] sm:$0xff]  ;;  %s88_s11 = smov 1   ;;  %s89_s12 = smov [#allocation5]  }
   0xe   :  { %22 = vrot.lane.b32.xlu0 %v21_v0, %s88_s11  ;;  %s31_s13 = sshll.u32 %s89_s12, 4  ;;  %s32_s13 = int_to_ptr.vmem [resolvable:$true] %s31_s13 }
   0xf   :  { %s63_s14 = scalar_lea.vmem %s32_s13, 128  ;;  %p68_p6 = scmp.lt.s32.totalorder %s32_s13, %s32_s13 }
  0x10   :  { %p64_p5 = scmp.ne.s32.totalorder %s32_s13, %s63_s14  ;;  %p69_p7 = scmp.lt.s32.totalorder %s63_s14, %s63_s14 }
  0x12   :  { %p70_p8 = por %p69_p7, %p68_p6 }
  0x14   :  { %p71_p9 = pnand %p70_p8, %p64_p5 }
  0x80   :  { %v23_v1 = vpop.permute.xlu0 %22 }
  0x81   :  { %24 = vst [vmem:[#allocation5] sm:$0xff] %v23_v1 }
  0x82   :  { %74 = shalt.err (!%p71_p9)
}
  0x83   :  { %34 = dma.vmem_to_hbm [thread:$0]  %s32_s13, 128, %s107_s1, [#allocation4]  }
  0x84   :  { %85 = dma.done.wait [#allocation4], 128  }
  0x85   :  { %86 = vsyncadd [#allocation4], 4294967168 }
  0x86   :  { %38 = vsyncpa [#allocation3], 1 }
  0x87   :  { %39 = vsyncpa [#allocation4], 1 }

</bundles_post_ra>
